<compile_context>
chip_gen: v7x
topology: tpu7x:2x2x1
jax: 0.10.0
libtpu: 0.0.40
codegen_flags: <defaults>
</compile_context>

<pallas_src>
import functools

import numpy as np
import jax
import jax.numpy as jnp
from jax.experimental import pallas as pl
from jax.experimental.pallas import tpu as pltpu


def _round_up(x, m):
    return (x + m - 1) // m * m


def _shift_cols(x, use_roll):
    """y[:, :, j] = x[:, :, (j + 1) % W]."""
    if use_roll:
        return pltpu.roll(x, shift=x.shape[2] - 1, axis=2)
    return jnp.concatenate([x[:, :, 1:], x[:, :, :1]], axis=2)


def _shift_rows(x, use_roll):
    """y[:, i, :] = x[:, (i + 1) % th, :]."""
    if use_roll:
        return pltpu.roll(x, shift=x.shape[1] - 1, axis=1)
    return jnp.concatenate([x[:, 1:, :], x[:, :1, :]], axis=1)


def _dwt_l1_partial_kernel(pred_ref, targ_ref, mask_ref, out_ref, *, use_roll):
    """Partial |Haar(pred - target)| sums for one (bm, th, W) block.

    Writes a lane-dense (1, 1, 2, 128) block: row 0 = sum|LL diff|,
    row 1 = sum over the three high bands of |H diff|.
    """
    # DWT is linear: transform the difference once (f32 accumulation).
    d = pred_ref[...].astype(jnp.float32) - targ_ref[...].astype(jnp.float32)

    # Neighbour along W (lanes): wrapped column lands on odd j (W even) and is
    # discarded by the parity mask.
    nxt_w = _shift_cols(d, use_roll)
    sw = d + nxt_w                      # at even j: a + b
    tw = d - nxt_w                      # at even j: a - b
    # Neighbour along H (sublanes): wrapped row lands on odd i (th even).
    sw_dn = _shift_rows(sw, use_roll)   # at even i: c + e
    tw_dn = _shift_rows(tw, use_roll)   # at even i: c - e

    # Resident parity mask: 0.5 at (even row, even col), 0 elsewhere.
    w = mask_ref[...]
    ll_abs = jnp.abs(sw + sw_dn) * w                                   # |LL|
    h_abs = (jnp.abs(sw - sw_dn) + jnp.abs(tw + tw_dn)
             + jnp.abs(tw - tw_dn)) * w                                # |HL|+|LH|+|HH|

    s_ll = jnp.sum(ll_abs)
    s_h = jnp.sum(h_abs)

    out_ref[...] = jnp.concatenate(
        [jnp.full((1, 128), s_ll, dtype=jnp.float32),
         jnp.full((1, 128), s_h, dtype=jnp.float32)],
        axis=0,
    ).reshape(1, 1, 2, 128)


def _vmem_capacity_bytes():
    """Per-core VMEM capacity; conservative (v7x) fallback if unavailable."""
    try:
        info = pltpu.get_tpu_info()
        cap = getattr(info, "vmem_capacity_bytes", None)
        if cap:
            return int(cap)
    except Exception:
        pass
    return 64 * 1024 * 1024


def _partial_sums(p, t, mask, *, bm, m_count, th, vmem_limit, use_roll):
    """Run the partial-sum kernel over images [0, m_count) of p/t (m_count % bm == 0)."""
    _, H, W = p.shape
    num_m = m_count // bm
    num_h = H // th
    kernel = functools.partial(_dwt_l1_partial_kernel, use_roll=use_roll)
    out = pl.pallas_call(
        kernel,
        out_shape=jax.ShapeDtypeStruct((num_m, num_h, 2, 128), jnp.float32),
        grid=(num_m, num_h),
        in_specs=[
            pl.BlockSpec((bm, th, W), lambda m, h: (m, h, 0)),
            pl.BlockSpec((bm, th, W), lambda m, h: (m, h, 0)),
            pl.BlockSpec((th, W), lambda m, h: (0, 0)),   # resident parity mask
        ],
        out_specs=pl.BlockSpec((1, 1, 2, 128), lambda m, h: (m, h, 0, 0)),
        compiler_params=pltpu.CompilerParams(
            dimension_semantics=("parallel", "parallel"),
            vmem_limit_bytes=vmem_limit,
        ),
    )(p, t, mask)
    return jnp.sum(out[:, :, 0, 0]), jnp.sum(out[:, :, 1, 0])


def dwt_l1_loss(pred, target, loss_weight=1.0, reduction='mean', *, block_elems=None):
    """Forward of DWTLoss with module defaults: wave='haar', J=1, mode='zero', L1(mean)."""
    assert pred.shape == target.shape
    if reduction not in ('mean', 'sum', 'none'):
        raise ValueError(f'unsupported reduction: {reduction}')
    N, C, H, W = pred.shape
    assert H % 2 == 0 and W % 2 == 0, "even spatial dims (zero-pad-free level-1 haar)"
    Hh, Wh = H // 2, W // 2

    M = N * C
    p = pred.reshape(M, H, W)
    t = target.reshape(M, H, W)

    cap = _vmem_capacity_bytes()
    if block_elems is None:
        # Padded-footprint element target per block: ~4 MiB f32 on v5e/v6e
        # (128 MiB VMEM / core), ~2 MiB on v7x (64 MiB / core).
        block_elems = (1024 * 1024) if cap >= 96 * 1024 * 1024 else (512 * 1024)

    # (8,128)-padded VMEM footprint of one image's spatial plane.
    img_padded = _round_up(H, 8) * _round_up(W, 128)

    if img_padded <= block_elems:
        th = H
        bm = max(1, min(M, block_elems // img_padded))
        if M % bm != 0:
            # Prefer a nearby divisor of M so no remainder call is needed.
            for cand in range(bm, max(1, bm // 2) - 1, -1):
                if M % cand == 0:
                    bm = cand
                    break
    else:
        bm = 1
        th = H
        if H % 8 == 0:
            cand = min(H, max(8, ((block_elems // _round_up(W, 128)) // 8) * 8))
            while cand > 8 and H % cand != 0:
                cand -= 8
            if H % cand == 0:
                th = cand
        # TODO(synk): also tile W (multiples of 128) for extremely wide images,
        # and add an in-kernel H-tail mask when H is not a multiple of 8.

    # pltpu.roll only on tile-aligned blocks; otherwise the validated concat path.
    use_roll = (W % 128 == 0) and (th % 8 == 0)

    # Resident (th, W) parity mask with the Haar 1/2 folded in.
    mask_np = np.zeros((th, W), np.float32)
    mask_np[0::2, 0::2] = 0.5
    mask = jnp.asarray(mask_np)

    # Scoped-VMEM budget: 2 inputs x 2 pipeline buffers + ~12 live f32
    # block-sized temporaries + the resident mask (padded footprints).
    pe = bm * _round_up(th, 8) * _round_up(W, 128)
    in_item = np.dtype(pred.dtype).itemsize
    est = 4 * pe * in_item + 12 * pe * 4 + _round_up(th, 8) * _round_up(W, 128) * 4 + (1 << 16)
    vmem_limit = int(max(32 * 1024 * 1024, min(est, cap - 8 * 1024 * 1024)))

    # Main call over the bm-divisible prefix; tiny remainder call instead of a
    # full-tensor pad copy.
    m_main = (M // bm) * bm
    sum_ll, sum_h = _partial_sums(p, t, mask, bm=bm, m_count=m_main, th=th,
                                  vmem_limit=vmem_limit, use_roll=use_roll)
    if m_main < M:
        bm_tail = M - m_main
        p_tail = jax.lax.slice_in_dim(p, m_main, M, axis=0)
        t_tail = jax.lax.slice_in_dim(t, m_main, M, axis=0)
        s_ll2, s_h2 = _partial_sums(p_tail, t_tail, mask, bm=bm_tail, m_count=bm_tail,
                                    th=th, vmem_limit=vmem_limit, use_roll=use_roll)
        sum_ll = sum_ll + s_ll2
        sum_h = sum_h + s_h2

    # L1Loss(yl_p, yl_t): mean over (N, C, H/2, W/2)
    loss_ll = sum_ll / jnp.float32(N * C * Hh * Wh)
    # sum over batch of per-sample L1 means over (C, 3, H/2, W/2)
    loss_h = sum_h / jnp.float32(C * 3 * Hh * Wh)
    loss = loss_ll + loss_h
    # DWTLoss's `reduction` is applied to an already-scalar loss -> identity for
    # 'mean' / 'sum' / 'none', matching the PyTorch module.
    return jnp.float32(loss_weight) * loss


def _reference_loss(pred, target, loss_weight=1.0):
    """Pure-JAX reference of the PyTorch forward (haar, J=1, zero mode, L1 mean)."""
    def haar_dwt(x):
        a = x[:, :, 0::2, 0::2]
        b = x[:, :, 0::2, 1::2]
        c = x[:, :, 1::2, 0::2]
        d = x[:, :, 1::2, 1::2]
        ll = 0.5 * (a + b + c + d)
        lh = 0.5 * (a - b + c - d)
        hl = 0.5 * (a + b - c - d)
        hh = 0.5 * (a - b - c + d)
        return ll, jnp.stack([lh, hl, hh], axis=2)

    yl_p, yh_p = haar_dwt(pred)
    yl_t, yh_t = haar_dwt(target)
    loss_ll = jnp.mean(jnp.abs(yl_p - yl_t))
    loss_h = jnp.float32(0.0)
    for n in range(pred.shape[0]):           # mirrors the per-sample python loop
        loss_h = loss_h + jnp.mean(jnp.abs(yh_p[n] - yh_t[n]))
    return jnp.float32(loss_weight) * (loss_ll + loss_h)


if __name__ == "__main__":
    key = jax.random.PRNGKey(0)

    def _check(shape, block_elems=None):
        k1, k2 = jax.random.split(jax.random.fold_in(key, sum(shape)))
        pred = jax.random.normal(k1, shape, dtype=jnp.float32)
        target = jax.random.normal(k2, shape, dtype=jnp.float32)
        loss = jax.block_until_ready(
            dwt_l1_loss(pred, target, loss_weight=1.0, reduction='mean',
                        block_elems=block_elems))
        ref = jax.block_until_ready(_reference_loss(pred, target, loss_weight=1.0))
        assert np.allclose(np.asarray(loss), np.asarray(ref), rtol=1e-3, atol=1e-5), \
            (shape, loss, ref)

    # Primary small check (module-typical shape).
    _check((2, 4, 16, 16))
    # Exercise the H-tiling path (small forced block budget).
    _check((2, 3, 32, 16), block_elems=2048)
    # Exercise the remainder (tail) call when N*C has no convenient divisor.
    _check((7, 1, 16, 16), block_elems=5 * 2048)

    print("KERNEL_OK")
</pallas_src>

<mosaic_0001>
module attributes {stable_mosaic.version = 11 : i64} {
  func.func @_dwt_l1_partial_kernel(%arg0: i32, %arg1: i32, %arg2: memref<8x16x16xf32, #tpu.memory_space<vmem>>, %arg3: memref<8x16x16xf32, #tpu.memory_space<vmem>>, %arg4: memref<16x16xf32, #tpu.memory_space<vmem>>, %arg5: memref<1x1x2x128xf32, #tpu.memory_space<vmem>>) attributes {dimension_semantics = [#tpu.dimension_semantics<parallel>, #tpu.dimension_semantics<parallel>], iteration_bounds = array<i64: 1, 1>, scalar_prefetch = 0 : i64, scratch_operands = 0 : i64, tpu.core_type = #tpu.core_type<tc>, window_params = [{transform_indices = @transform_0, window_bounds = array<i64: 8, 16, 16>}, {transform_indices = @transform_1, window_bounds = array<i64: 8, 16, 16>}, {pipeline_mode = #tpu.pipeline_mode<synchronous>, transform_indices = @transform_2, window_bounds = array<i64: 16, 16>}, {transform_indices = @transform_3, window_bounds = array<i64: 1, 1, 2, 128>}]} {
    %c0 = arith.constant 0 : index
    %c0_0 = arith.constant 0 : index
    %c0_1 = arith.constant 0 : index
    %0 = vector.load %arg2[%c0, %c0_0, %c0_1] : memref<8x16x16xf32, #tpu.memory_space<vmem>>, vector<8x16x16xf32>
    %c0_2 = arith.constant 0 : index
    %c0_3 = arith.constant 0 : index
    %c0_4 = arith.constant 0 : index
    %1 = vector.load %arg3[%c0_2, %c0_3, %c0_4] : memref<8x16x16xf32, #tpu.memory_space<vmem>>, vector<8x16x16xf32>
    %2 = arith.subf %0, %1 : vector<8x16x16xf32>
    %3 = vector.extract_strided_slice %2 {offsets = [0, 0, 1], sizes = [8, 16, 15], strides = [1, 1, 1]} : vector<8x16x16xf32> to vector<8x16x15xf32>
    %4 = vector.extract_strided_slice %2 {offsets = [0, 0, 0], sizes = [8, 16, 1], strides = [1, 1, 1]} : vector<8x16x16xf32> to vector<8x16x1xf32>
    %5 = tpu.concatenate %3, %4 in 2 : vector<8x16x15xf32>, vector<8x16x1xf32> -> vector<8x16x16xf32>
    %6 = arith.addf %2, %5 : vector<8x16x16xf32>
    %7 = arith.subf %2, %5 : vector<8x16x16xf32>
    %8 = vector.extract_strided_slice %6 {offsets = [0, 1, 0], sizes = [8, 15, 16], strides = [1, 1, 1]} : vector<8x16x16xf32> to vector<8x15x16xf32>
    %9 = vector.extract_strided_slice %6 {offsets = [0, 0, 0], sizes = [8, 1, 16], strides = [1, 1, 1]} : vector<8x16x16xf32> to vector<8x1x16xf32>
    %10 = tpu.concatenate %8, %9 in 1 : vector<8x15x16xf32>, vector<8x1x16xf32> -> vector<8x16x16xf32>
    %11 = vector.extract_strided_slice %7 {offsets = [0, 1, 0], sizes = [8, 15, 16], strides = [1, 1, 1]} : vector<8x16x16xf32> to vector<8x15x16xf32>
    %12 = vector.extract_strided_slice %7 {offsets = [0, 0, 0], sizes = [8, 1, 16], strides = [1, 1, 1]} : vector<8x16x16xf32> to vector<8x1x16xf32>
    %13 = tpu.concatenate %11, %12 in 1 : vector<8x15x16xf32>, vector<8x1x16xf32> -> vector<8x16x16xf32>
    %c0_5 = arith.constant 0 : index
    %c0_6 = arith.constant 0 : index
    %14 = vector.load %arg4[%c0_5, %c0_6] : memref<16x16xf32, #tpu.memory_space<vmem>>, vector<16x16xf32>
    %15 = arith.addf %6, %10 : vector<8x16x16xf32>
    %16 = math.absf %15 : vector<8x16x16xf32>
    %17 = vector.shape_cast %14 : vector<16x16xf32> to vector<1x16x16xf32>
    %18 = vector.broadcast %17 : vector<1x16x16xf32> to vector<8x16x16xf32>
    %19 = arith.mulf %16, %18 : vector<8x16x16xf32>
    %20 = arith.subf %6, %10 : vector<8x16x16xf32>
    %21 = math.absf %20 : vector<8x16x16xf32>
    %22 = arith.addf %7, %13 : vector<8x16x16xf32>
    %23 = math.absf %22 : vector<8x16x16xf32>
    %24 = arith.addf %21, %23 : vector<8x16x16xf32>
    %25 = arith.subf %7, %13 : vector<8x16x16xf32>
    %26 = math.absf %25 : vector<8x16x16xf32>
    %27 = arith.addf %24, %26 : vector<8x16x16xf32>
    %28 = vector.shape_cast %14 : vector<16x16xf32> to vector<1x16x16xf32>
    %29 = vector.broadcast %28 : vector<1x16x16xf32> to vector<8x16x16xf32>
    %30 = arith.mulf %27, %29 : vector<8x16x16xf32>
    %31 = vector.shape_cast %19 : vector<8x16x16xf32> to vector<1x8x16x16xf32>
    %cst = arith.constant dense<0.000000e+00> : vector<1xf32>
    %32 = vector.multi_reduction <add>, %31, %cst [1, 2, 3] : vector<1x8x16x16xf32> to vector<1xf32>
    %33 = vector.shape_cast %32 : vector<1xf32> to vector<1x1x1x1xf32>
    %34 = vector.extract %33[0, 0, 0, 0] : f32 from vector<1x1x1x1xf32>
    %35 = vector.shape_cast %30 : vector<8x16x16xf32> to vector<1x8x16x16xf32>
    %cst_7 = arith.constant dense<0.000000e+00> : vector<1xf32>
    %36 = vector.multi_reduction <add>, %35, %cst_7 [1, 2, 3] : vector<1x8x16x16xf32> to vector<1xf32>
    %37 = vector.shape_cast %36 : vector<1xf32> to vector<1x1x1x1xf32>
    %38 = vector.extract %37[0, 0, 0, 0] : f32 from vector<1x1x1x1xf32>
    %39 = vector.broadcast %34 : f32 to vector<1x128xf32>
    %40 = vector.broadcast %38 : f32 to vector<1x128xf32>
    %41 = tpu.concatenate %39, %40 in 0 : vector<1x128xf32>, vector<1x128xf32> -> vector<2x128xf32>
    %42 = vector.shape_cast %41 : vector<2x128xf32> to vector<1x1x2x128xf32>
    %c0_8 = arith.constant 0 : index
    %c0_9 = arith.constant 0 : index
    %c0_10 = arith.constant 0 : index
    %c0_11 = arith.constant 0 : index
    %43 = vector.load %arg5[%c0_8, %c0_9, %c0_10, %c0_11] : memref<1x1x2x128xf32, #tpu.memory_space<vmem>>, vector<1x1x2x128xf32>
    tpu.vector_store %arg5[%c0_8, %c0_9, %c0_10, %c0_11], %42 {strides = array<i32>} : memref<1x1x2x128xf32, #tpu.memory_space<vmem>>, vector<1x1x2x128xf32>,
    return
  }
  func.func @transform_0(%arg0: i32, %arg1: i32) -> (i32, i32, i32) {
    %c0_i32 = arith.constant 0 : i32
    %c0_i32_0 = arith.constant 0 : i32
    return %arg0, %arg1, %c0_i32 : i32, i32, i32
  }
  func.func @transform_1(%arg0: i32, %arg1: i32) -> (i32, i32, i32) {
    %c0_i32 = arith.constant 0 : i32
    %c0_i32_0 = arith.constant 0 : i32
    return %arg0, %arg1, %c0_i32 : i32, i32, i32
  }
  func.func @transform_2(%arg0: i32, %arg1: i32) -> (i32, i32) {
    %c0_i32 = arith.constant 0 : i32
    %c0_i32_0 = arith.constant 0 : i32
    %c0_i32_1 = arith.constant 0 : i32
    return %c0_i32, %c0_i32_0 : i32, i32
  }
  func.func @transform_3(%arg0: i32, %arg1: i32) -> (i32, i32, i32, i32) {
    %c0_i32 = arith.constant 0 : i32
    %c0_i32_0 = arith.constant 0 : i32
    %c0_i32_1 = arith.constant 0 : i32
    return %arg0, %arg1, %c0_i32, %c0_i32_0 : i32, i32, i32, i32
  }
}

</mosaic_0001>

<bundles_post_ra>
// kernel: tpu_custom_call.1
= control target key start
LH: loop header
LB: loop body
LE: loop exit
PB: predicated region body
PF: predicated region fallthrough
CT: control target
= control target key end

     0   :  { %8 = vsyncpa [#allocation3], 0  ;;  %s1223_s0 = inlined_call_operand.hbm [shape: f32[8,16,16], index: 0, kind: input, shape index: {}]   ;;  %s1224_s1 = inlined_call_operand.hbm [shape: f32[8,16,16], index: 1, kind: input, shape index: {}]   ;;  %s1225_s2 = inlined_call_operand.hbm [shape: f32[16,16], index: 2, kind: input, shape index: {}]   ;;  %s1226_s3 = inlined_call_operand.hbm [shape: f32[1,1,2,128], index: 3, kind: output, shape index: {}]  }
   0x1   :  { %9 = vsyncpa [#allocation6], 0 }
   0x2   :  { %10 = vsyncpa [#allocation4], 0  ;;  %s812_s12 = smov [#allocation5]   ;;  %s813_s14 = smov [#allocation2]  }
   0x3   :  { %s28_s13 = sshll.u32 %s812_s12, 4  ;;  %s16_s15 = sshll.u32 %s813_s14, 4  ;;  %s29_s13 = int_to_ptr.vmem [resolvable:$true] %s28_s13  ;;  %s840_s15 = int_to_ptr.vmem [resolvable:$true] %s16_s15 }
   0x4   :  { %s718_s18 = scalar_lea.hbm %s1224_s1, 2048 }
   0x5   :  { %p719_p0 = scmp.ne.s32.totalorder %s1224_s1, %s718_s18  ;;  %p722_p1 = scmp.lt.u32.totalorder %s718_s18, %s1224_s1 }
   0x7   :  { %p724_p2 = pnand %p722_p1, %p719_p0 }
   0x9   :  { %727 = shalt.err (!%p724_p2)
}
   0xa   :  { %s728_s23 = scalar_lea.vmem %s29_s13, 2048  ;;  %p733_p4 = scmp.lt.s32.totalorder %s29_s13, %s29_s13 }
   0xb   :  { %p729_p3 = scmp.ne.s32.totalorder %s29_s13, %s728_s23  ;;  %p734_p5 = scmp.lt.s32.totalorder %s728_s23, %s728_s23 }
   0xd   :  { %p735_p6 = por %p734_p5, %p733_p4 }
   0xf   :  { %p736_p7 = pnand %p735_p6, %p729_p3 }
  0x11   :  { %739 = shalt.err (!%p736_p7)
}
  0x12   :  { %s814_s24 = smov 128   ;;  %s815_s25 = smov 8  }
  0x13   :  { %34 = dma.hbm_to_vmem [thread:$0]  %s1224_s1, 2048, %s29_s13, [#allocation6], %s814_s24, %s814_s24, %s815_s25  }
  0x14   :  { %s740_s30 = scalar_lea.hbm %s1223_s0, 2048 }
  0x15   :  { %p741_p8 = scmp.ne.s32.totalorder %s1223_s0, %s740_s30  ;;  %p744_p9 = scmp.lt.u32.totalorder %s740_s30, %s1223_s0 }
  0x17   :  { %p746_p10 = pnand %p744_p9, %p741_p8 }
  0x19   :  { %749 = shalt.err (!%p746_p10)
}
  0x1a   :  { %s750_s8 = scalar_lea.vmem %s840_s15, 2048  ;;  %p755_p12 = scmp.lt.s32.totalorder %s840_s15, %s840_s15 }
  0x1b   :  { %p751_p11 = scmp.ne.s32.totalorder %s840_s15, %s750_s8  ;;  %p756_p13 = scmp.lt.s32.totalorder %s750_s8, %s750_s8 }
  0x1d   :  { %p757_p0 = por %p756_p13, %p755_p12 }
  0x1f   :  { %p758_p1 = pnand %p757_p0, %p751_p11 }
  0x21   :  { %761 = shalt.err (!%p758_p1)
}
  0x22   :  { %22 = dma.hbm_to_vmem [thread:$0]  %s1223_s0, 2048, %s840_s15, [#allocation3], %s814_s24, %s814_s24, %s815_s25  }
  0x23   :  { %s816_s10 = smov [#allocation7]   ;;  %s762_s14 = scalar_lea.hbm %s1225_s2, 256 }
  0x24   :  { %s40_s11 = sshll.u32 %s816_s10, 4  ;;  %p763_p2 = scmp.ne.s32.totalorder %s1225_s2, %s762_s14  ;;  %s41_s11 = int_to_ptr.vmem [resolvable:$true] %s40_s11 }
  0x25   :  { %p766_p3 = scmp.lt.u32.totalorder %s762_s14, %s1225_s2 }
  0x27   :  { %p768_p4 = pnand %p766_p3, %p763_p2 }
  0x29   :  { %771 = shalt.err (!%p768_p4)
}
  0x2a   :  { %s772_s20 = scalar_lea.vmem %s41_s11, 256  ;;  %p777_p6 = scmp.lt.s32.totalorder %s41_s11, %s41_s11 }
  0x2b   :  { %p773_p5 = scmp.ne.s32.totalorder %s41_s11, %s772_s20  ;;  %p778_p7 = scmp.lt.s32.totalorder %s772_s20, %s772_s20 }
  0x2d   :  { %p779_p8 = por %p778_p7, %p777_p6 }
  0x2f   :  { %p780_p9 = pnand %p779_p8, %p773_p5 }
  0x31   :  { %783 = shalt.err (!%p780_p9)
}
  0x32   :  { %46 = dma.hbm_to_vmem [thread:$0]  %s1225_s2, 256, %s41_s11, [#allocation6], %s814_s24, %s814_s24, %s815_s25  }
  0x33   :  { %806 = dma.done.wait [#allocation3], 2048  }
  0x34   :  { %807 = vsyncadd [#allocation3], 4294965248 }
  0x35   :  { %808 = dma.done.wait [#allocation6], 2304  }
  0x36   :  { %809 = vsyncadd [#allocation6], 4294964992  ;;  %v56_v0 = vld [vmem:[#allocation2] sm:$0xff]  ;;  %v57_v2 = vld [vmem:[#allocation2 + $0x8] sm:$0xff]  ;;  %s817_s21 = smov 15   ;;  %s818_s22 = smov 127  }
  0x37   :  { %v72_v1 = vld [vmem:[#allocation5] sm:$0xff]  ;;  %v73_v4 = vld [vmem:[#allocation5 + $0x8] sm:$0xff]  ;;  %v59_v6 = vld [vmem:[#allocation2 + $0x18] sm:$0xff]  ;;  %vm216_vm0 = vcmask 121856   ;;  %vm281_vm1 = vcmask 1046528   ;;  %vm604_vm2 = vcmask 130048  }
  0x38   :  { %v892_v3 = vsub.f32 %v56_v0, %v72_v1  ;;  %v898_v5 = vsub.f32 %v57_v2, %v73_v4  ;;  %v75_v7 = vld [vmem:[#allocation5 + $0x18] sm:$0xff]  ;;  %v58_v8 = vld [vmem:[#allocation2 + $0x10] sm:$0xff]  ;;  %v61_v12 = vld [vmem:[#allocation2 + $0x28] sm:$0xff]  ;;  %s819_s23 = smov [#allocation8]   ;;  %vm687_vm3 = vcmask 1040384  }
  0x39   :  { %v74_v9 = vld [vmem:[#allocation5 + $0x10] sm:$0xff]  ;;  %v904_v10 = vsub.f32 %v59_v6, %v75_v7  ;;  %v77_v13 = vld [vmem:[#allocation5 + $0x28] sm:$0xff]  ;;  %v60_v14 = vld [vmem:[#allocation2 + $0x20] sm:$0xff]  ;;  %s696_s24 = sshll.u32 %s819_s23, 4  ;;  %s697_s24 = int_to_ptr.vmem [resolvable:$true] %s696_s24 }
  0x3a   :  { %168 = vrot.lane.b32.xlu1 %v892_v3, %s817_s21  ;;  %120 = vrot.lane.b32.xlu0 %v892_v3, %s818_s22  ;;  %v906_v11 = vsub.f32 %v58_v8, %v74_v9  ;;  %v76_v15 = vld [vmem:[#allocation5 + $0x20] sm:$0xff]  ;;  %v916_v16 = vsub.f32 %v61_v12, %v77_v13  ;;  %v63_v18 = vld [vmem:[#allocation2 + $0x38] sm:$0xff]  ;;  %v62_v20 = vld [vmem:[#allocation2 + $0x30] sm:$0xff]  ;;  %s784_s26 = scalar_lea.vmem %s697_s24, 32  ;;  %p789_p11 = scmp.lt.s32.totalorder %s697_s24, %s697_s24 }
  0x3b   :  { %v918_v17 = vsub.f32 %v60_v14, %v76_v15  ;;  %v79_v19 = vld [vmem:[#allocation5 + $0x38] sm:$0xff]  ;;  %v78_v21 = vld [vmem:[#allocation5 + $0x30] sm:$0xff]  ;;  %v65_v24 = vld [vmem:[#allocation2 + $0x48] sm:$0xff]  ;;  %p785_p10 = scmp.ne.s32.totalorder %s697_s24, %s784_s26  ;;  %p790_p12 = scmp.lt.s32.totalorder %s784_s26, %s784_s26 }
  0x3c   :  { %v928_v22 = vsub.f32 %v63_v18, %v79_v19  ;;  %v930_v23 = vsub.f32 %v62_v20, %v78_v21  ;;  %v81_v25 = vld [vmem:[#allocation5 + $0x48] sm:$0xff]  ;;  %v64_v26 = vld [vmem:[#allocation2 + $0x40] sm:$0xff]  ;;  %v67_v30 = vld [vmem:[#allocation2 + $0x58] sm:$0xff] }
  0x3d   :  { %v80_v27 = vld [vmem:[#allocation5 + $0x40] sm:$0xff]  ;;  %v940_v28 = vsub.f32 %v65_v24, %v81_v25  ;;  %v83_v31 = vld [vmem:[#allocation5 + $0x58] sm:$0xff]  ;;  %v66_v32 = vld [vmem:[#allocation2 + $0x50] sm:$0xff]  ;;  %p791_p13 = por %p790_p12, %p789_p11 }
  0x3e   :  { %170 = vrot.lane.b32.xlu1 %v898_v5, %s817_s21  ;;  %122 = vrot.lane.b32.xlu0 %v898_v5, %s818_s22  ;;  %v942_v29 = vsub.f32 %v64_v26, %v80_v27  ;;  %v82_v33 = vld [vmem:[#allocation5 + $0x50] sm:$0xff]  ;;  %v952_v34 = vsub.f32 %v67_v30, %v83_v31  ;;  %v69_v36 = vld [vmem:[#allocation2 + $0x68] sm:$0xff]  ;;  %v68_v38 = vld [vmem:[#allocation2 + $0x60] sm:$0xff] }
  0x3f   :  { %v954_v35 = vsub.f32 %v66_v32, %v82_v33  ;;  %v85_v37 = vld [vmem:[#allocation5 + $0x68] sm:$0xff]  ;;  %v84_v39 = vld [vmem:[#allocation5 + $0x60] sm:$0xff]  ;;  %v71_v42 = vld [vmem:[#allocation2 + $0x78] sm:$0xff]  ;;  %p792_p0 = pnand %p791_p13, %p785_p10 }
  0x40   :  { %v964_v40 = vsub.f32 %v69_v36, %v85_v37  ;;  %v966_v41 = vsub.f32 %v68_v38, %v84_v39  ;;  %v87_v43 = vld [vmem:[#allocation5 + $0x78] sm:$0xff]  ;;  %v70_v44 = vld [vmem:[#allocation2 + $0x70] sm:$0xff]  ;;  %v1000_v9 = vld [vmem:[#allocation7 + $0x8] sm:$0xff] }
  0x41   :  { %v86_v45 = vld [vmem:[#allocation5 + $0x70] sm:$0xff]  ;;  %v976_v46 = vsub.f32 %v71_v42, %v87_v43 }
  0x42   :  { %126 = vrot.lane.b32.xlu1 %v904_v10, %s818_s22  ;;  %124 = vrot.lane.b32.xlu0 %v906_v11, %s818_s22  ;;  %v978_v47 = vsub.f32 %v70_v44, %v86_v45 }
  0x46   :  { %174 = vrot.lane.b32.xlu1 %v904_v10, %s817_s21  ;;  %172 = vrot.lane.b32.xlu0 %v906_v11, %s817_s21 }
  0x4a   :  { %130 = vrot.lane.b32.xlu1 %v916_v16, %s818_s22  ;;  %128 = vrot.lane.b32.xlu0 %v918_v17, %s818_s22 }
  0x4e   :  { %178 = vrot.lane.b32.xlu1 %v916_v16, %s817_s21  ;;  %176 = vrot.lane.b32.xlu0 %v918_v17, %s817_s21 }
  0x52   :  { %134 = vrot.lane.b32.xlu1 %v928_v22, %s818_s22  ;;  %132 = vrot.lane.b32.xlu0 %v930_v23, %s818_s22 }
  0x56   :  { %182 = vrot.lane.b32.xlu1 %v928_v22, %s817_s21  ;;  %180 = vrot.lane.b32.xlu0 %v930_v23, %s817_s21 }
  0x5a   :  { %138 = vrot.lane.b32.xlu1 %v940_v28, %s818_s22  ;;  %136 = vrot.lane.b32.xlu0 %v942_v29, %s818_s22 }
  0x5e   :  { %186 = vrot.lane.b32.xlu1 %v940_v28, %s817_s21  ;;  %184 = vrot.lane.b32.xlu0 %v942_v29, %s817_s21 }
  0x62   :  { %142 = vrot.lane.b32.xlu1 %v952_v34, %s818_s22  ;;  %140 = vrot.lane.b32.xlu0 %v954_v35, %s818_s22 }
  0x66   :  { %190 = vrot.lane.b32.xlu1 %v952_v34, %s817_s21  ;;  %188 = vrot.lane.b32.xlu0 %v954_v35, %s817_s21 }
  0x6a   :  { %146 = vrot.lane.b32.xlu1 %v964_v40, %s818_s22  ;;  %144 = vrot.lane.b32.xlu0 %v966_v41, %s818_s22 }
  0x6e   :  { %194 = vrot.lane.b32.xlu1 %v964_v40, %s817_s21  ;;  %192 = vrot.lane.b32.xlu0 %v966_v41, %s817_s21 }
  0x72   :  { %150 = vrot.lane.b32.xlu1 %v976_v46, %s818_s22  ;;  %148 = vrot.lane.b32.xlu0 %v978_v47, %s818_s22 }
  0x76   :  { %198 = vrot.lane.b32.xlu1 %v976_v46, %s817_s21  ;;  %196 = vrot.lane.b32.xlu0 %v978_v47, %s817_s21 }
  0xac   :  { %v169_v48 = vpop.permute.xlu1 %168  ;;  %v121_v49 = vpop.permute.xlu0 %120 }
  0xad   :  { %v217_v50 = vsel %vm216_vm0, %v121_v49, %v169_v48 }
  0xae   :  { %v233_v51 = vadd.f32 %v217_v50, %v892_v3  ;;  %v249_v52 = vsub.f32 %v892_v3, %v217_v50 }
  0xb0   :  { %v171_v53 = vpop.permute.xlu1 %170  ;;  %v123_v54 = vpop.permute.xlu0 %122  ;;  %v282_v58 = vrot.slane %v233_v51, 1  ;;  %v354_v59 = vrot.slane %v249_v52, 1 }
  0xb1   :  { %v218_v55 = vsel %vm216_vm0, %v123_v54, %v171_v53 }
  0xb2   :  { %v234_v56 = vadd.f32 %v218_v55, %v898_v5  ;;  %v250_v57 = vsub.f32 %v898_v5, %v218_v55  ;;  %v998_v5 = vld [vmem:[#allocation7] sm:$0xff] }
  0xb4   :  { %v283_v60 = vrot.slane %v234_v56, 1  ;;  %v355_v61 = vrot.slane %v250_v57, 1  ;;  %v127_v62 = vpop.permute.xlu1 %126  ;;  %v125_v63 = vpop.permute.xlu0 %124 }
  0xb6   :  { %v284_v0 = vsel %vm281_vm1, %v282_v58, %v283_v60  ;;  %v330_v1 = vsel %vm281_vm1, %v283_v60, %v282_v58  ;;  %v356_v2 = vsel %vm281_vm1, %v354_v59, %v355_v61  ;;  %v402_v3 = vsel %vm281_vm1, %v355_v61, %v354_v59 }
  0xb7   :  { %v412_v4 = vadd.f32 %v284_v0, %v233_v51  ;;  %v413_v6 = vadd.f32 %v330_v1, %v234_v56  ;;  %v460_v7 = vsub.f32 %v233_v51, %v284_v0  ;;  %v461_v8 = vsub.f32 %v234_v56, %v330_v1 }
  0xb8   :  { %v492_v12 = vadd.f32 %v356_v2, %v249_v52  ;;  %v493_v13 = vadd.f32 %v402_v3, %v250_v57  ;;  %v540_v14 = vsub.f32 %v249_v52, %v356_v2  ;;  %v541_v15 = vsub.f32 %v250_v57, %v402_v3  ;;  %v175_v18 = vpop.permute.xlu1 %174  ;;  %v173_v19 = vpop.permute.xlu0 %172 }
  0xb9   :  { %v428_v20 = vand.u32 2147483647, %v412_v4  ;;  %v429_v21 = vand.u32 2147483647, %v413_v6  ;;  %v476_v24 = vand.u32 2147483647, %v460_v7  ;;  %v220_v25 = vsel %vm216_vm0, %v127_v62, %v175_v18 }
  0xba   :  { %v477_v26 = vand.u32 2147483647, %v461_v8  ;;  %v508_v27 = vand.u32 2147483647, %v492_v12  ;;  %v509_v30 = vand.u32 2147483647, %v493_v13  ;;  %v236_v33 = vadd.f32 %v220_v25, %v904_v10 }
  0xbb   :  { %v444_v31 = vmul.f32 %v428_v20, %v998_v5  ;;  %v556_v32 = vand.u32 2147483647, %v540_v14  ;;  %v557_v38 = vand.u32 2147483647, %v541_v15  ;;  %v252_v39 = vsub.f32 %v904_v10, %v220_v25 }
  0xbc   :  { %v524_v36 = vadd.f32 %v508_v27, %v476_v24  ;;  %v525_v37 = vadd.f32 %v509_v30, %v477_v26  ;;  %v131_v42 = vpop.permute.xlu1 %130  ;;  %v129_v43 = vpop.permute.xlu0 %128  ;;  %v445_v44 = vmul.f32 %v429_v21, %v1000_v9  ;;  %v219_v45 = vsel %vm216_vm0, %v125_v63, %v173_v19 }
  0xbd   :  { %v286_v50 = vrot.slane %v236_v33, 1  ;;  %v358_v51 = vrot.slane %v252_v39, 1  ;;  %v235_v52 = vadd.f32 %v219_v45, %v906_v11  ;;  %v251_v53 = vsub.f32 %v906_v11, %v219_v45 }
  0xbe   :  { %v572_v48 = vadd.f32 %v556_v32, %v524_v36  ;;  %v573_v49 = vadd.f32 %v557_v38, %v525_v37  ;;  %v605_v55 = vsel %vm604_vm2, %v444_v31, 0.0  ;;  %v606_v57 = vsel %vm604_vm2, %v445_v44, 0.0 }
  0xbf   :  { %v285_v58 = vrot.slane %v235_v52, 1  ;;  %v357_v59 = vrot.slane %v251_v53, 1 }
  0xc0   :  { %v588_v54 = vmul.f32 %v572_v48, %v998_v5  ;;  %v179_v10 = vpop.permute.xlu1 %178  ;;  %v177_v56 = vpop.permute.xlu0 %176  ;;  %v589_v61 = vmul.f32 %v573_v49, %v1000_v9 }
  0xc1   :  { %v222_v60 = vsel %vm216_vm0, %v131_v42, %v179_v10  ;;  %v221_v11 = vsel %vm216_vm0, %v129_v43, %v177_v56  ;;  %v287_v0 = vsel %vm281_vm1, %v285_v58, %v286_v50  ;;  %v331_v1 = vsel %vm281_vm1, %v286_v50, %v285_v58 }
  0xc2   :  { %v645_v62 = vsel %vm604_vm2, %v588_v54, 0.0  ;;  %v1017_v63 = vadd.f32 %v222_v60, %v916_v16  ;;  %v359_v2 = vsel %vm281_vm1, %v357_v59, %v358_v51  ;;  %v1024_v3 = vsub.f32 %v916_v16, %v222_v60 }
  0xc3   :  { %v403_v4 = vsel %vm281_vm1, %v358_v51, %v357_v59  ;;  %v414_v6 = vadd.f32 %v287_v0, %v235_v52  ;;  %v415_v7 = vadd.f32 %v331_v1, %v236_v33  ;;  %v462_v8 = vsub.f32 %v235_v52, %v287_v0 }
  0xc4   :  { %v135_v12 = vpop.permute.xlu1 %134  ;;  %v1027_v13 = vpop.permute.xlu0 %132  ;;  %v463_v14 = vsub.f32 %v236_v33, %v331_v1  ;;  %v494_v15 = vadd.f32 %v359_v2, %v251_v53  ;;  %v495_v18 = vadd.f32 %v403_v4, %v252_v39  ;;  %v542_v19 = vsub.f32 %v251_v53, %v359_v2 }
  0xc5   :  { %v430_v20 = vand.u32 2147483647, %v414_v6  ;;  %v431_v21 = vand.u32 2147483647, %v415_v7  ;;  %v478_v24 = vand.u32 2147483647, %v462_v8  ;;  %v543_v25 = vsub.f32 %v252_v39, %v403_v4 }
  0xc6   :  { %v479_v26 = vand.u32 2147483647, %v463_v14  ;;  %v510_v27 = vand.u32 2147483647, %v494_v15  ;;  %v511_v16 = vand.u32 2147483647, %v495_v18  ;;  %v237_v30 = vadd.f32 %v221_v11, %v918_v17 }
  0xc7   :  { %v646_v31 = vsel %vm604_vm2, %v589_v61, 0.0  ;;  %v446_v32 = vmul.f32 %v430_v20, %v998_v5  ;;  %v447_v36 = vmul.f32 %v431_v21, %v1000_v9  ;;  %v558_v37 = vand.u32 2147483647, %v542_v19 }
  0xc8   :  { %v183_v33 = vpop.permute.xlu1 %182  ;;  %v181_v38 = vpop.permute.xlu0 %180  ;;  %v526_v42 = vadd.f32 %v510_v27, %v478_v24  ;;  %v527_v43 = vadd.f32 %v511_v16, %v479_v26  ;;  %v559_v44 = vand.u32 2147483647, %v543_v25  ;;  %v289_v45 = vrot.slane %v1017_v63, 1 }
  0xc9   :  { %v608_v39 = vsel %vm604_vm2, %v446_v32, 0.0  ;;  %v361_v48 = vrot.slane %v1024_v3, 1  ;;  %v253_v49 = vsub.f32 %v918_v17, %v221_v11  ;;  %v288_v50 = vrot.slane %v237_v30, 1 }
  0xca   :  { %v607_v51 = vadd.f32 %v606_v57, %v605_v55  ;;  %v647_v52 = vadd.f32 %v646_v31, %v645_v62  ;;  %v574_v53 = vadd.f32 %v558_v37, %v526_v42  ;;  %v575_v54 = vadd.f32 %v559_v44, %v527_v43 }
  0xcb   :  { %v290_v10 = vsel %vm281_vm1, %v288_v50, %v289_v45  ;;  %v332_v56 = vsel %vm281_vm1, %v289_v45, %v288_v50  ;;  %v360_v58 = vrot.slane %v253_v49, 1  ;;  %v224_v59 = vsel %vm216_vm0, %v135_v12, %v183_v33 }
  0xcc   :  { %v139_v60 = vpop.permute.xlu1 %138  ;;  %v137_v61 = vpop.permute.xlu0 %136  ;;  %v590_v0 = vmul.f32 %v574_v53, %v998_v5  ;;  %v609_v1 = vadd.f32 %v608_v39, %v607_v51  ;;  %v610_v2 = vsel %vm604_vm2, %v447_v36, 0.0  ;;  %v416_v17 = vadd.f32 %v290_v10, %v237_v30 }
  0xcd   :  { %v362_v55 = vsel %vm281_vm1, %v360_v58, %v361_v48  ;;  %v404_v57 = vsel %vm281_vm1, %v361_v48, %v360_v58  ;;  %v417_v62 = vadd.f32 %v332_v56, %v1017_v63  ;;  %v464_v11 = vsub.f32 %v237_v30, %v290_v10 }
  0xce   :  { %v591_v4 = vmul.f32 %v575_v54, %v1000_v9  ;;  %v432_v6 = vand.u32 2147483647, %v416_v17  ;;  %v465_v7 = vsub.f32 %v1017_v63, %v332_v56  ;;  %v1048_v8 = vadd.f32 %v224_v59, %v928_v22 }
  0xcf   :  { %v648_v12 = vsel %vm604_vm2, %v590_v0, 0.0  ;;  %v433_v14 = vand.u32 2147483647, %v417_v62  ;;  %v480_v15 = vand.u32 2147483647, %v464_v11  ;;  %v496_v18 = vadd.f32 %v362_v55, %v253_v49 }
  0xd0   :  { %v187_v19 = vpop.permute.xlu1 %186  ;;  %v448_v20 = vmul.f32 %v432_v6, %v998_v5  ;;  %v481_v21 = vand.u32 2147483647, %v465_v7  ;;  %v497_v24 = vadd.f32 %v404_v57, %v1024_v3  ;;  %v544_v25 = vsub.f32 %v253_v49, %v362_v55  ;;  %v185_v63 = vpop.permute.xlu0 %184 }
  0xd1   :  { %v611_v26 = vadd.f32 %v610_v2, %v609_v1  ;;  %v512_v27 = vand.u32 2147483647, %v496_v18  ;;  %v545_v16 = vsub.f32 %v1024_v3, %v404_v57  ;;  %v649_v30 = vadd.f32 %v648_v12, %v647_v52 }
  0xd2   :  { %v650_v31 = vsel %vm604_vm2, %v591_v4, 0.0  ;;  %v513_v32 = vand.u32 2147483647, %v497_v24  ;;  %v256_v36 = vsub.f32 %v928_v22, %v224_v59  ;;  %v449_v37 = vmul.f32 %v433_v14, %v1000_v9 }
  0xd3   :  { %v528_v33 = vadd.f32 %v512_v27, %v480_v15  ;;  %v560_v42 = vand.u32 2147483647, %v544_v25  ;;  %v612_v43 = vsel %vm604_vm2, %v448_v20, 0.0  ;;  %v561_v39 = vand.u32 2147483647, %v545_v16 }
  0xd4   :  { %v1058_v44 = vpop.permute.xlu1 %142  ;;  %v529_v45 = vadd.f32 %v513_v32, %v481_v21  ;;  %v292_v48 = vrot.slane %v1048_v8, 1  ;;  %v223_v3 = vsel %vm216_vm0, %v1027_v13, %v181_v38  ;;  %v364_v50 = vrot.slane %v256_v36, 1  ;;  %v1068_v1 = vpop.permute.xlu0 %140 }
  0xd5   :  { %v576_v49 = vadd.f32 %v560_v42, %v528_v33  ;;  %v239_v51 = vadd.f32 %v223_v3, %v930_v23  ;;  %v255_v22 = vsub.f32 %v930_v23, %v223_v3  ;;  %v651_v52 = vadd.f32 %v650_v31, %v649_v30 }
  0xd6   :  { %v577_v53 = vadd.f32 %v561_v39, %v529_v45  ;;  %v613_v54 = vadd.f32 %v612_v43, %v611_v26  ;;  %v226_v10 = vsel %vm216_vm0, %v139_v60, %v187_v19  ;;  %v225_v0 = vsel %vm216_vm0, %v137_v61, %v185_v63 }
  0xd7   :  { %v592_v56 = vmul.f32 %v576_v49, %v998_v5  ;;  %v291_v58 = vrot.slane %v239_v51, 1  ;;  %v363_v59 = vrot.slane %v255_v22, 1  ;;  %v614_v2 = vsel %vm604_vm2, %v449_v37, 0.0 }
  0xd8   :  { %v1070_v13 = vpop.permute.xlu1 %190  ;;  %v593_v38 = vmul.f32 %v577_v53, %v1000_v9  ;;  %v1075_v23 = vadd.f32 %v226_v10, %v940_v28  ;;  %v1078_v17 = vsub.f32 %v940_v28, %v226_v10  ;;  %v241_v4 = vadd.f32 %v225_v0, %v942_v29  ;;  %v189_v16 = vpop.permute.xlu0 %188 }
  0xd9   :  { %v652_v60 = vsel %vm604_vm2, %v592_v56, 0.0  ;;  %v293_v55 = vsel %vm281_vm1, %v291_v58, %v292_v48  ;;  %v333_v61 = vsel %vm281_vm1, %v292_v48, %v291_v58  ;;  %v365_v57 = vsel %vm281_vm1, %v363_v59, %v364_v50 }
  0xda   :  { %v405_v62 = vsel %vm281_vm1, %v364_v50, %v363_v59  ;;  %v418_v11 = vadd.f32 %v293_v55, %v239_v51  ;;  %v1087_v6 = vsub.f32 %v942_v29, %v225_v0  ;;  %v419_v7 = vadd.f32 %v333_v61, %v1048_v8 }
  0xdb   :  { %v466_v28 = vsub.f32 %v239_v51, %v293_v55  ;;  %v467_v12 = vsub.f32 %v1048_v8, %v333_v61  ;;  %v498_v14 = vadd.f32 %v365_v57, %v255_v22  ;;  %v653_v18 = vadd.f32 %v652_v60, %v651_v52 }
  0xdc   :  { %v1091_v15 = vpop.permute.xlu1 %146  ;;  %v434_v19 = vand.u32 2147483647, %v418_v11  ;;  %v499_v20 = vadd.f32 %v405_v62, %v256_v36  ;;  %v546_v21 = vsub.f32 %v255_v22, %v365_v57  ;;  %v435_v24 = vand.u32 2147483647, %v419_v7  ;;  %v145_v0 = vpop.permute.xlu0 %144 }
  0xdd   :  { %v482_v25 = vand.u32 2147483647, %v466_v28  ;;  %v483_v26 = vand.u32 2147483647, %v467_v12  ;;  %v547_v27 = vsub.f32 %v256_v36, %v405_v62  ;;  %v654_v29 = vsel %vm604_vm2, %v593_v38, 0.0 }
  0xde   :  { %v450_v63 = vmul.f32 %v434_v19, %v998_v5  ;;  %v514_v30 = vand.u32 2147483647, %v498_v14  ;;  %v515_v31 = vand.u32 2147483647, %v499_v20  ;;  %v562_v32 = vand.u32 2147483647, %v546_v21 }
  0xdf   :  { %v563_v8 = vand.u32 2147483647, %v547_v27  ;;  %v295_v37 = vrot.slane %v1075_v23, 1  ;;  %v367_v33 = vrot.slane %v1078_v17, 1  ;;  %v294_v39 = vrot.slane %v241_v4, 1 }
  0xe0   :  { %v530_v42 = vadd.f32 %v514_v30, %v482_v25  ;;  %v531_v43 = vadd.f32 %v515_v31, %v483_v26  ;;  %v616_v45 = vsel %vm604_vm2, %v450_v63, 0.0  ;;  %v615_v48 = vadd.f32 %v614_v2, %v613_v54  ;;  %v195_v50 = vpop.permute.xlu1 %194  ;;  %v193_v63 = vpop.permute.xlu0 %192 }
  0xe1   :  { %v655_v36 = vadd.f32 %v654_v29, %v653_v18  ;;  %v451_v3 = vmul.f32 %v435_v24, %v1000_v9  ;;  %v366_v49 = vrot.slane %v1087_v6, 1  ;;  %v296_v52 = vsel %vm281_vm1, %v294_v39, %v295_v37 }
  0xe2   :  { %v578_v51 = vadd.f32 %v562_v32, %v530_v42  ;;  %v579_v22 = vadd.f32 %v563_v8, %v531_v43  ;;  %v334_v53 = vsel %vm281_vm1, %v295_v37, %v294_v39  ;;  %v617_v10 = vadd.f32 %v616_v45, %v615_v48 }
  0xe3   :  { %v368_v56 = vsel %vm281_vm1, %v366_v49, %v367_v33  ;;  %v406_v58 = vsel %vm281_vm1, %v367_v33, %v366_v49  ;;  %v420_v59 = vadd.f32 %v296_v52, %v241_v4  ;;  %v421_v2 = vadd.f32 %v334_v53, %v1075_v23 }
  0xe4   :  { %v594_v54 = vmul.f32 %v578_v51, %v998_v5  ;;  %v595_v38 = vmul.f32 %v579_v22, %v1000_v9  ;;  %v468_v60 = vsub.f32 %v241_v4, %v296_v52  ;;  %v469_v61 = vsub.f32 %v1075_v23, %v334_v53  ;;  %v151_v4 = vpop.permute.xlu1 %150 }
  0xe5   :  { %v436_v55 = vand.u32 2147483647, %v420_v59  ;;  %v500_v57 = vadd.f32 %v368_v56, %v1087_v6  ;;  %v501_v62 = vadd.f32 %v406_v58, %v1078_v17  ;;  %v437_v7 = vand.u32 2147483647, %v421_v2 }
  0xe6   :  { %v656_v11 = vsel %vm604_vm2, %v594_v54, 0.0  ;;  %v484_v28 = vand.u32 2147483647, %v468_v60  ;;  %v228_v12 = vsel %vm216_vm0, %v1058_v44, %v1070_v13  ;;  %v618_v20 = vsel %vm604_vm2, %v451_v3, 0.0 }
  0xe7   :  { %v657_v14 = vadd.f32 %v656_v11, %v655_v36  ;;  %v452_v18 = vmul.f32 %v436_v55, %v998_v5  ;;  %v516_v19 = vand.u32 2147483647, %v500_v57  ;;  %v658_v23 = vsel %vm604_vm2, %v595_v38, 0.0 }
  0xe8   :  { %v485_v21 = vand.u32 2147483647, %v469_v61  ;;  %v548_v24 = vsub.f32 %v1087_v6, %v368_v56  ;;  %v517_v25 = vand.u32 2147483647, %v501_v62  ;;  %v549_v27 = vsub.f32 %v1078_v17, %v406_v58  ;;  %v199_v3 = vpop.permute.xlu1 %198 }
  0xe9   :  { %v532_v26 = vadd.f32 %v516_v19, %v484_v28  ;;  %v244_v29 = vadd.f32 %v228_v12, %v952_v34  ;;  %v619_v44 = vadd.f32 %v618_v20, %v617_v10  ;;  %v659_v13 = vadd.f32 %v658_v23, %v657_v14 }
  0xea   :  { %v1121_v30 = vmul.f32 %v437_v7, %v1000_v9  ;;  %v564_v31 = vand.u32 2147483647, %v548_v24  ;;  %v620_v32 = vsel %vm604_vm2, %v452_v18, 0.0  ;;  %v260_v8 = vsub.f32 %v952_v34, %v228_v12 }
  0xeb   :  { %v298_v37 = vrot.slane %v244_v29, 1  ;;  %v227_v6 = vsel %vm216_vm0, %v1068_v1, %v189_v16  ;;  %v230_v43 = vsel %vm216_vm0, %v1091_v15, %v195_v50  ;;  %v533_v45 = vadd.f32 %v517_v25, %v485_v21  ;;  %v149_v50 = vpop.permute.xlu0 %148 }
  0xec   :  { %v580_v33 = vadd.f32 %v564_v31, %v532_v26  ;;  %v243_v17 = vadd.f32 %v227_v6, %v954_v35  ;;  %v259_v42 = vsub.f32 %v954_v35, %v227_v6  ;;  %v565_v39 = vand.u32 2147483647, %v549_v27 }
  0xed   :  { %v370_v48 = vrot.slane %v260_v8, 1  ;;  %v229_v36 = vsel %vm216_vm0, %v145_v0, %v193_v63  ;;  %v1133_v49 = vadd.f32 %v620_v32, %v619_v44  ;;  %v246_v16 = vadd.f32 %v230_v43, %v964_v40 }
  0xee   :  { %v596_v34 = vmul.f32 %v580_v33, %v998_v5  ;;  %v297_v51 = vrot.slane %v243_v17, 1  ;;  %v369_v1 = vrot.slane %v259_v42, 1  ;;  %v1137_v22 = vsub.f32 %v964_v40, %v230_v43 }
  0xef   :  { %v245_v35 = vadd.f32 %v229_v36, %v966_v41  ;;  %v261_v15 = vsub.f32 %v966_v41, %v229_v36  ;;  %v232_v56 = vsel %vm216_vm0, %v151_v4, %v199_v3  ;;  %v1147_v41 = vadd.f32 %v565_v39, %v533_v45  ;;  %v197_v4 = vpop.permute.xlu0 %196 }
  0xf0   :  { %v299_v52 = vsel %vm281_vm1, %v297_v51, %v298_v37  ;;  %v335_v53 = vsel %vm281_vm1, %v298_v37, %v297_v51  ;;  %v371_v10 = vsel %vm281_vm1, %v369_v1, %v370_v48  ;;  %v660_v58 = vsel %vm604_vm2, %v596_v34, 0.0 }
  0xf1   :  { %v407_v59 = vsel %vm281_vm1, %v370_v48, %v369_v1  ;;  %v422_v0 = vadd.f32 %v299_v52, %v243_v17  ;;  %v423_v40 = vadd.f32 %v335_v53, %v244_v29  ;;  %v470_v54 = vsub.f32 %v243_v17, %v299_v52 }
  0xf2   :  { %v471_v38 = vsub.f32 %v244_v29, %v335_v53  ;;  %v502_v2 = vadd.f32 %v371_v10, %v259_v42  ;;  %v503_v60 = vadd.f32 %v407_v59, %v260_v8  ;;  %v550_v61 = vsub.f32 %v259_v42, %v371_v10 }
  0xf3   :  { %v438_v55 = vand.u32 2147483647, %v422_v0  ;;  %v551_v57 = vsub.f32 %v260_v8, %v407_v59  ;;  %v486_v62 = vand.u32 2147483647, %v470_v54  ;;  %v301_v7 = vrot.slane %v246_v16, 1 }
  0xf4   :  { %v518_v11 = vand.u32 2147483647, %v502_v2  ;;  %v373_v28 = vrot.slane %v1137_v22, 1  ;;  %v1150_v12 = vadd.f32 %v660_v58, %v659_v13  ;;  %v439_v14 = vand.u32 2147483647, %v423_v40 }
  0xf5   :  { %v487_v18 = vand.u32 2147483647, %v471_v38  ;;  %v1153_v19 = vadd.f32 %v232_v56, %v976_v46  ;;  %v454_v20 = vmul.f32 %v438_v55, %v998_v5  ;;  %v519_v23 = vand.u32 2147483647, %v503_v60 }
  0xf6   :  { %v300_v21 = vrot.slane %v245_v35, 1  ;;  %v372_v24 = vrot.slane %v261_v15, 1  ;;  %v534_v25 = vadd.f32 %v518_v11, %v486_v62  ;;  %v566_v26 = vand.u32 2147483647, %v550_v61 }
  0xf7   :  { %v1156_v27 = vand.u32 2147483647, %v551_v57  ;;  %v1159_v29 = vsub.f32 %v976_v46, %v232_v56  ;;  %v231_v31 = vsel %vm216_vm0, %v149_v50, %v197_v4  ;;  %v535_v33 = vadd.f32 %v519_v23, %v487_v18 }
  0xf8   :  { %v302_v63 = vsel %vm281_vm1, %v300_v21, %v301_v7  ;;  %v336_v44 = vsel %vm281_vm1, %v301_v7, %v300_v21  ;;  %v374_v13 = vsel %vm281_vm1, %v372_v24, %v373_v28  ;;  %v408_v32 = vsel %vm281_vm1, %v373_v28, %v372_v24 }
  0xf9   :  { %v424_v8 = vadd.f32 %v302_v63, %v245_v35  ;;  %v472_v37 = vsub.f32 %v245_v35, %v302_v63  ;;  %v473_v6 = vsub.f32 %v246_v16, %v336_v44  ;;  %v504_v17 = vadd.f32 %v374_v13, %v261_v15 }
  0xfa   :  { %v505_v42 = vadd.f32 %v408_v32, %v1137_v22  ;;  %v552_v43 = vsub.f32 %v261_v15, %v374_v13  ;;  %v624_v46 = vsel %vm604_vm2, %v454_v20, 0.0  ;;  %v304_v48 = vrot.slane %v1153_v19, 1 }
  0xfb   :  { %v440_v45 = vand.u32 2147483647, %v424_v8  ;;  %v488_v39 = vand.u32 2147483647, %v472_v37  ;;  %v582_v36 = vadd.f32 %v566_v26, %v534_v25  ;;  %v489_v3 = vand.u32 2147483647, %v473_v6 }
  0xfc   :  { %v520_v34 = vand.u32 2147483647, %v504_v17  ;;  %v247_v51 = vadd.f32 %v231_v31, %v978_v47  ;;  %v553_v1 = vsub.f32 %v1137_v22, %v408_v32  ;;  %v376_v35 = vrot.slane %v1159_v29, 1 }
  0xfd   :  { %v263_v50 = vsub.f32 %v978_v47, %v231_v31  ;;  %v425_v52 = vadd.f32 %v336_v44, %v246_v16  ;;  %v456_v15 = vmul.f32 %v440_v45, %v998_v5  ;;  %v521_v53 = vand.u32 2147483647, %v505_v42 }
  0xfe   :  { %v568_v10 = vand.u32 2147483647, %v552_v43  ;;  %v303_v56 = vrot.slane %v247_v51, 1  ;;  %v536_v58 = vadd.f32 %v520_v34, %v488_v39  ;;  %v622_v40 = vsel %vm604_vm2, %v1121_v30, 0.0 }
  0xff   :  { %v375_v59 = vrot.slane %v263_v50, 1  ;;  %v441_v0 = vand.u32 2147483647, %v425_v52  ;;  %v455_v38 = vmul.f32 %v439_v14, %v1000_v9  ;;  %v623_v47 = vadd.f32 %v622_v40, %v1133_v49 }
 0x100   :  { %v305_v54 = vsel %vm281_vm1, %v303_v56, %v304_v48  ;;  %v337_v22 = vsel %vm281_vm1, %v304_v48, %v303_v56  ;;  %v628_v49 = vsel %vm604_vm2, %v456_v15, 0.0  ;;  %v598_v23 = vmul.f32 %v582_v36, %v998_v5 }
 0x101   :  { %v377_v16 = vsel %vm281_vm1, %v375_v59, %v376_v35  ;;  %v426_v2 = vadd.f32 %v305_v54, %v247_v51  ;;  %v474_v60 = vsub.f32 %v247_v51, %v305_v54  ;;  %v427_v55 = vadd.f32 %v337_v22, %v1153_v19 }
 0x102   :  { %v506_v61 = vadd.f32 %v377_v16, %v263_v50  ;;  %v554_v57 = vsub.f32 %v263_v50, %v377_v16  ;;  %v457_v62 = vmul.f32 %v441_v0, %v1000_v9  ;;  %v475_v30 = vsub.f32 %v1153_v19, %v337_v22 }
 0x103   :  { %v442_v11 = vand.u32 2147483647, %v426_v2  ;;  %v490_v7 = vand.u32 2147483647, %v474_v60  ;;  %v443_v28 = vand.u32 2147483647, %v427_v55  ;;  %v625_v18 = vadd.f32 %v624_v46, %v623_v47 }
 0x104   :  { %v522_v4 = vand.u32 2147483647, %v506_v61  ;;  %v626_v14 = vsel %vm604_vm2, %v455_v38, 0.0  ;;  %v409_v20 = vsel %vm281_vm1, %v376_v35, %v375_v59  ;;  %v584_v21 = vadd.f32 %v568_v10, %v536_v58 }
 0x105   :  { %v458_v24 = vmul.f32 %v442_v11, %v998_v5  ;;  %v627_v25 = vadd.f32 %v626_v14, %v625_v18  ;;  %v491_v63 = vand.u32 2147483647, %v475_v30  ;;  %v507_v19 = vadd.f32 %v409_v20, %v1159_v29 }
 0x106   :  { %v538_v26 = vadd.f32 %v522_v4, %v490_v7  ;;  %v537_v44 = vadd.f32 %v521_v53, %v489_v3  ;;  %v570_v13 = vand.u32 2147483647, %v554_v57  ;;  %v459_v31 = vmul.f32 %v443_v28, %v1000_v9 }
 0x107   :  { %v629_v32 = vadd.f32 %v628_v49, %v627_v25  ;;  %v630_v8 = vsel %vm604_vm2, %v457_v62, 0.0  ;;  %v632_v37 = vsel %vm604_vm2, %v458_v24, 0.0  ;;  %v523_v6 = vand.u32 2147483647, %v507_v19 }
 0x108   :  { %v569_v17 = vand.u32 2147483647, %v553_v1  ;;  %v583_v42 = vadd.f32 %v1156_v27, %v535_v33  ;;  %v555_v46 = vsub.f32 %v1159_v29, %v409_v20  ;;  %v597_v45 = vmul.f32 %v1147_v41, %v1000_v9 }
 0x109   :  { %v631_v43 = vadd.f32 %v630_v8, %v629_v32  ;;  %v539_v39 = vadd.f32 %v523_v6, %v491_v63  ;;  %v586_v36 = vadd.f32 %v570_v13, %v538_v26  ;;  %v600_v3 = vmul.f32 %v584_v21, %v998_v5 }
 0x10a   :  { %v585_v48 = vadd.f32 %v569_v17, %v537_v44  ;;  %v599_v51 = vmul.f32 %v583_v42, %v1000_v9  ;;  %v662_v35 = vsel %vm604_vm2, %v597_v45, 0.0  ;;  %v664_v1 = vsel %vm604_vm2, %v598_v23, 0.0 }
 0x10b   :  { %v633_v34 = vadd.f32 %v632_v37, %v631_v43  ;;  %v634_v27 = vsel %vm604_vm2, %v459_v31, 0.0  ;;  %v663_v33 = vadd.f32 %v662_v35, %v1150_v12  ;;  %v571_v50 = vand.u32 2147483647, %v555_v46 }
 0x10c   :  { %v602_v41 = vmul.f32 %v586_v36, %v998_v5  ;;  %v601_v53 = vmul.f32 %v585_v48, %v1000_v9  ;;  %v666_v10 = vsel %vm604_vm2, %v599_v51, 0.0  ;;  %v668_v56 = vsel %vm604_vm2, %v600_v3, 0.0 }
 0x10d   :  { %v635_v29 = vadd.f32 %v634_v27, %v633_v34  ;;  %v665_v52 = vadd.f32 %v664_v1, %v663_v33  ;;  %v587_v15 = vadd.f32 %v571_v50, %v539_v39 }
 0x10e   :  { %v670_v40 = vsel %vm604_vm2, %v601_v53, 0.0  ;;  %v672_v12 = vsel %vm604_vm2, %v602_v41, 0.0 }
 0x10f   :  { %636 = vadd.xlane.f32.xlu0 %v635_v29  ;;  %v667_v58 = vadd.f32 %v666_v10, %v665_v52  ;;  %v603_v0 = vmul.f32 %v587_v15, %v1000_v9 }
 0x111   :  { %v669_v59 = vadd.f32 %v668_v56, %v667_v58  ;;  %v674_v5 = vsel %vm604_vm2, %v603_v0, 0.0 }
 0x113   :  { %v671_v54 = vadd.f32 %v670_v40, %v669_v59 }
 0x115   :  { %v673_v22 = vadd.f32 %v672_v12, %v671_v54 }
 0x117   :  { %v675_v38 = vadd.f32 %v674_v5, %v673_v22 }
 0x119   :  { %676 = vadd.xlane.f32.xlu1 %v675_v38 }
 0x19c   :  { %v637_v47 = vpop.xlane.xlu0 %636 }
 0x19d   :  { %v638_v16 = vrot.slane %v637_v47, 4 }
 0x19f   :  { %v639_v2 = vadd.f32 %v638_v16, %v637_v47 }
 0x1a1   :  { %v640_v60 = vrot.slane %v639_v2, 2 }
 0x1a3   :  { %v641_v55 = vadd.f32 %v640_v60, %v639_v2 }
 0x1a5   :  { %v642_v61 = vrot.slane %v641_v55, 1 }
 0x1a6   :  { %v677_v57 = vpop.xlane.xlu1 %676 }
 0x1a7   :  { %v643_v62 = vadd.f32 %v642_v61, %v641_v55  ;;  %v678_v30 = vrot.slane %v677_v57, 4 }
 0x1a9   :  { %706 = vpush %v643_v62  ;;  %v679_v9 = vadd.f32 %v678_v30, %v677_v57 }
 0x1ab   :  { %v680_v11 = vrot.slane %v679_v9, 2 }
 0x1ad   :  { %v681_v7 = vadd.f32 %v680_v11, %v679_v9 }
 0x1af   :  { %v682_v28 = vrot.slane %v681_v7, 1 }
 0x1b1   :  { %v683_v18 = vadd.f32 %v682_v28, %v681_v7 }
 0x1b3   :  { %708 = vpush %v683_v18 }
 0x1da   :  { %s707_s2 = spop %706 }
 0x1db   :  { %v685_v4 = vstv %s707_s2 }
 0x1e4   :  { %s709_s25 = spop %708 }
 0x1e5   :  { %v686_v14 = vstv %s709_s25 }
 0x1e6   :  { %v688_v49 = vsel %vm687_vm3, %v685_v4, %v686_v14 }
 0x1e7   :  { %689 = vst [vmem:[#allocation8] sm:$0x3] %v688_v49 }
 0x1e8   :  { %795 = shalt.err (!%p792_p0)
}
 0x1e9   :  { %s796_s29 = scalar_lea.hbm %s1226_s3, 32 }
 0x1ea   :  { %p797_p1 = scmp.ne.s32.totalorder %s1226_s3, %s796_s29  ;;  %p800_p2 = scmp.lt.u32.totalorder %s796_s29, %s1226_s3 }
 0x1ec   :  { %p802_p3 = pnand %p800_p2, %p797_p1 }
 0x1ee   :  { %805 = shalt.err (!%p802_p3)
}
 0x1ef   :  { %699 = dma.vmem_to_hbm [thread:$0]  %s697_s24, 32, %s1226_s3, [#allocation4]  }
 0x1f0   :  { %810 = dma.done.wait [#allocation4], 32  }
 0x1f1   :  { %811 = vsyncadd [#allocation4], 4294967264 }
 0x1f2   :  { %703 = vsyncpa [#allocation3], 1 }
 0x1f3   :  { %704 = vsyncpa [#allocation6], 1 }
 0x1f4   :  { %705 = vsyncpa [#allocation4], 1 }

</bundles_post_ra>
